<compile_context>
chip_gen: v7x
topology: tpu7x:2x2x1
jax: 0.10.0
libtpu: 0.0.40
codegen_flags: <defaults>
</compile_context>

<pallas_src>
import jax
import jax.numpy as jnp
from jax.experimental import pallas as pl
from jax.experimental.pallas import tpu as pltpu


def _mish_kernel(x_ref, o_ref):
    x = x_ref[...].astype(jnp.float32)
    # y = x * tanh(softplus(x)) = x * (1 - 2 / ((1 + e^x)^2 + 1))
    e = jnp.exp(x)
    u = 1.0 + e
    u = u * u
    t = 1.0 - 2.0 / (u + 1.0)   # exact divide: Newton steps hide under DMA
    o_ref[...] = (x * t).astype(o_ref.dtype)


_LANE_CANDIDATES = (8192, 4096, 2048, 1024, 512, 256, 128)


def mish(x, *, target_block_bytes=2 * 1024 * 1024):
    """Mish activation via a Pallas TPU kernel. Works on any shape/dtype;
    computes in f32 internally and returns the input dtype."""
    orig_shape = x.shape
    dtype = x.dtype
    n = x.size
    if n == 0:
        return x

    flat = x.reshape(-1)

    # Widest lane count (multiple of 128) that divides the element count.
    lanes = next((c for c in _LANE_CANDIDATES if n % c == 0), None)
    pad = 0
    if lanes is None:
        # Ragged size (rare): pad once up to a multiple of 128 lanes.
        lanes = 128
        pad = (-n) % lanes
        flat = jnp.pad(flat, (0, pad))
    rows = flat.size // lanes
    x2d = flat.reshape(rows, lanes)

    # ~2 MiB blocks: big enough to amortise per-step overhead (~85%+ of HBM
    # roofline), small enough that 2x(in+out) double buffering fits the
    # default scoped VMEM on every generation (v5e 16 MiB, v6e/v7x 32 MiB).
    itemsize = jnp.dtype(dtype).itemsize
    block_rows = max(1, target_block_bytes // (lanes * itemsize))
    block_rows = max(8, (block_rows // 8) * 8)   # sublane-aligned
    if block_rows >= rows:
        block_rows = rows                        # full-dim block is always legal

    grid = (pl.cdiv(rows, block_rows),)          # partial last block -> masked stores

    out = pl.pallas_call(
        _mish_kernel,
        out_shape=jax.ShapeDtypeStruct((rows, lanes), dtype),
        grid_spec=pltpu.PrefetchScalarGridSpec(
            num_scalar_prefetch=0,
            grid=grid,
            in_specs=[pl.BlockSpec((block_rows, lanes), lambda i: (i, 0))],
            out_specs=pl.BlockSpec((block_rows, lanes), lambda i: (i, 0)),
        ),
        compiler_params=pltpu.CompilerParams(
            dimension_semantics=("parallel",),   # lets v7x shard across its 2 TCs
        ),
    )(x2d)

    out_flat = out.reshape(-1)
    if pad:
        out_flat = out_flat[:n]
    return out_flat.reshape(orig_shape)


def _mish_ref(x):
    xf = x.astype(jnp.float32)
    return (xf * jnp.tanh(jax.nn.softplus(xf))).astype(x.dtype)


if __name__ == "__main__":
    key = jax.random.PRNGKey(0)

    # Small NCHW-like input consistent with how Mish is used in the network.
    x = jax.random.normal(key, (2, 4, 16, 16), dtype=jnp.float32) * 3.0
    y = mish(x)
    jax.block_until_ready(y)
    y_ref = _mish_ref(x)
    assert y.shape == x.shape and y.dtype == x.dtype
    assert jnp.allclose(y, y_ref, atol=1e-5, rtol=1e-5)

    # Ragged element count (exercises the 128-lane fallback / masked path).
    k2 = jax.random.fold_in(key, 1)
    x2 = jax.random.normal(k2, (2, 3, 7, 11), dtype=jnp.float32) * 3.0
    y2 = mish(x2)
    jax.block_until_ready(y2)
    assert jnp.allclose(y2, _mish_ref(x2), atol=1e-5, rtol=1e-5)

    # bf16 passthrough (halves HBM traffic; math still done in f32 in-kernel).
    x3 = x.astype(jnp.bfloat16)
    y3 = mish(x3)
    jax.block_until_ready(y3)
    assert y3.dtype == jnp.bfloat16
    assert jnp.allclose(y3.astype(jnp.float32),
                        _mish_ref(x3).astype(jnp.float32),
                        atol=2e-2, rtol=2e-2)

    print("KERNEL_OK")
</pallas_src>

<mosaic_0001>
module attributes {stable_mosaic.version = 11 : i64} {
  func.func @_mish_kernel(%arg0: i32, %arg1: memref<1x2048xf32, #tpu.memory_space<vmem>>, %arg2: memref<1x2048xf32, #tpu.memory_space<vmem>>) attributes {dimension_semantics = [#tpu.dimension_semantics<parallel>], iteration_bounds = array<i64: 1>, scalar_prefetch = 0 : i64, scratch_operands = 0 : i64, tpu.core_type = #tpu.core_type<tc>, window_params = [{transform_indices = @transform_0, window_bounds = array<i64: 1, 2048>}, {transform_indices = @transform_1, window_bounds = array<i64: 1, 2048>}]} {
    %c0 = arith.constant 0 : index
    %c0_0 = arith.constant 0 : index
    %0 = vector.load %arg1[%c0, %c0_0] : memref<1x2048xf32, #tpu.memory_space<vmem>>, vector<1x2048xf32>
    %1 = math.exp %0 : vector<1x2048xf32>
    %cst = arith.constant 1.000000e+00 : f32
    %2 = vector.broadcast %cst : f32 to vector<1x2048xf32>
    %3 = arith.addf %2, %1 : vector<1x2048xf32>
    %4 = arith.mulf %3, %3 : vector<1x2048xf32>
    %cst_1 = arith.constant 1.000000e+00 : f32
    %5 = vector.broadcast %cst_1 : f32 to vector<1x2048xf32>
    %6 = arith.addf %4, %5 : vector<1x2048xf32>
    %cst_2 = arith.constant 2.000000e+00 : f32
    %7 = vector.broadcast %cst_2 : f32 to vector<1x2048xf32>
    %8 = arith.divf %7, %6 : vector<1x2048xf32>
    %cst_3 = arith.constant 1.000000e+00 : f32
    %9 = vector.broadcast %cst_3 : f32 to vector<1x2048xf32>
    %10 = arith.subf %9, %8 : vector<1x2048xf32>
    %11 = arith.mulf %0, %10 : vector<1x2048xf32>
    %c0_4 = arith.constant 0 : index
    %c0_5 = arith.constant 0 : index
    %12 = vector.load %arg2[%c0_4, %c0_5] : memref<1x2048xf32, #tpu.memory_space<vmem>>, vector<1x2048xf32>
    tpu.vector_store %arg2[%c0_4, %c0_5], %11 {strides = array<i32>} : memref<1x2048xf32, #tpu.memory_space<vmem>>, vector<1x2048xf32>,
    return
  }
  func.func @transform_0(%arg0: i32) -> (i32, i32) {
    %c0_i32 = arith.constant 0 : i32
    %c0_i32_0 = arith.constant 0 : i32
    return %arg0, %c0_i32 : i32, i32
  }
  func.func @transform_1(%arg0: i32) -> (i32, i32) {
    %c0_i32 = arith.constant 0 : i32
    %c0_i32_0 = arith.constant 0 : i32
    return %arg0, %c0_i32 : i32, i32
  }
}

</mosaic_0001>

<bundles_post_ra>
// kernel: tpu_custom_call.1
= control target key start
LH: loop header
LB: loop body
LE: loop exit
PB: predicated region body
PF: predicated region fallthrough
CT: control target
= control target key end

     0   :  { %6 = vsyncpa [#allocation3], 0  ;;  %s152_s0 = inlined_call_operand.hbm [shape: f32[1,2048], index: 0, kind: input, shape index: {}]   ;;  %s153_s1 = inlined_call_operand.hbm [shape: f32[1,2048], index: 1, kind: output, shape index: {}]  }
   0x1   :  { %7 = vsyncpa [#allocation4], 0  ;;  %s116_s6 = smov [#allocation2]   ;;  %s68_s10 = scalar_lea.hbm %s152_s0, 256 }
   0x2   :  { %s14_s7 = sshll.u32 %s116_s6, 4  ;;  %p69_p0 = scmp.ne.s32.totalorder %s152_s0, %s68_s10  ;;  %s15_s7 = int_to_ptr.vmem [resolvable:$true] %s14_s7 }
   0x3   :  { %p72_p1 = scmp.lt.u32.totalorder %s68_s10, %s152_s0 }
   0x5   :  { %p74_p2 = pnand %p72_p1, %p69_p0 }
   0x7   :  { %77 = shalt.err (!%p74_p2)
}
   0x8   :  { %s78_s15 = scalar_lea.vmem %s15_s7, 256  ;;  %p83_p4 = scmp.lt.s32.totalorder %s15_s7, %s15_s7 }
   0x9   :  { %p79_p3 = scmp.ne.s32.totalorder %s15_s7, %s78_s15  ;;  %p84_p5 = scmp.lt.s32.totalorder %s78_s15, %s78_s15 }
   0xb   :  { %p85_p6 = por %p84_p5, %p83_p4 }
   0xd   :  { %p86_p7 = pnand %p85_p6, %p79_p3 }
   0xf   :  { %89 = shalt.err (!%p86_p7)
}
  0x10   :  { %17 = dma.hbm_to_vmem [thread:$0]  %s152_s0, 256, %s15_s7, [#allocation3]  }
  0x11   :  { %112 = dma.done.wait [#allocation3], 256  }
  0x12   :  { %113 = vsyncadd [#allocation3], 4294967040  ;;  %v21_v0 = vld [vmem:[#allocation2] sm:$0xff]  ;;  %v22_v1 = vld [vmem:[#allocation2 + $0x8] sm:$0xff]  ;;  %s117_s0 = smov [#allocation5]  }
  0x13   :  { %v23_v2 = vmul.f32 1.442695, %v21_v0  ;;  %v25_v3 = vmul.f32 1.442695, %v22_v1  ;;  %s49_s18 = sshll.u32 %s117_s0, 4  ;;  %s50_s18 = int_to_ptr.vmem [resolvable:$true] %s49_s18 }
  0x14   :  { %s90_s19 = scalar_lea.vmem %s50_s18, 256  ;;  %p95_p9 = scmp.lt.s32.totalorder %s50_s18, %s50_s18 }
  0x15   :  { %60 = vpow2.f32 %v23_v2  ;;  %p91_p8 = scmp.ne.s32.totalorder %s50_s18, %s90_s19  ;;  %p96_p10 = scmp.lt.s32.totalorder %s90_s19, %s90_s19 }
  0x16   :  { %62 = vpow2.f32 %v25_v3 }
  0x17   :  { %p97_p11 = por %p96_p10, %p95_p9 }
  0x19   :  { %p98_p12 = pnand %p97_p11, %p91_p8 }
  0x1f   :  { %v61_v4 = vpop.eup %60 }
  0x20   :  { %v63_v5 = vpop.eup %62  ;;  %v27_v6 = vadd.f32 1.0, %v61_v4 }
  0x21   :  { %v28_v7 = vadd.f32 1.0, %v63_v5 }
  0x22   :  { %v29_v8 = vmul.f32 %v27_v6, %v27_v6 }
  0x23   :  { %v30_v9 = vmul.f32 %v28_v7, %v28_v7 }
  0x24   :  { %v31_v10 = vadd.f32 1.0, %v29_v8 }
  0x25   :  { %v32_v11 = vadd.f32 1.0, %v30_v9 }
  0x26   :  { %64 = vrcp.f32 %v31_v10 }
  0x27   :  { %66 = vrcp.f32 %v32_v11 }
  0x30   :  { %v65_v12 = vpop.eup %64 }
  0x31   :  { %v67_v13 = vpop.eup %66  ;;  %v34_v14 = vmul.f32 2.0, %v65_v12 }
  0x32   :  { %v36_v15 = vmul.f32 2.0, %v67_v13 }
  0x33   :  { %v37_v16 = vsub.f32 1.0, %v34_v14 }
  0x34   :  { %v38_v17 = vsub.f32 1.0, %v36_v15 }
  0x35   :  { %v39_v18 = vmul.f32 %v37_v16, %v21_v0 }
  0x36   :  { %v40_v19 = vmul.f32 %v38_v17, %v22_v1 }
  0x37   :  { %41 = vst [vmem:[#allocation5] sm:$0xff] %v39_v18 }
  0x38   :  { %42 = vst [vmem:[#allocation5 + $0x8] sm:$0xff] %v40_v19 }
  0x39   :  { %101 = shalt.err (!%p98_p12)
}
  0x3a   :  { %s102_s22 = scalar_lea.hbm %s153_s1, 256 }
  0x3b   :  { %p103_p13 = scmp.ne.s32.totalorder %s153_s1, %s102_s22  ;;  %p106_p0 = scmp.lt.u32.totalorder %s102_s22, %s153_s1 }
  0x3d   :  { %p108_p1 = pnand %p106_p0, %p103_p13 }
  0x3f   :  { %111 = shalt.err (!%p108_p1)
}
  0x40   :  { %52 = dma.vmem_to_hbm [thread:$0]  %s50_s18, 256, %s153_s1, [#allocation4]  }
  0x41   :  { %114 = dma.done.wait [#allocation4], 256  }
  0x42   :  { %115 = vsyncadd [#allocation4], 4294967040 }
  0x43   :  { %56 = vsyncpa [#allocation3], 1 }
  0x44   :  { %57 = vsyncpa [#allocation4], 1 }

</bundles_post_ra>
